<compile_context>
chip_gen: v5e
topology: v5e:2x2
jax: 0.10.0
libtpu: 0.0.40
codegen_flags: <defaults>
</compile_context>

<pallas_src>
import jax
import jax.numpy as jnp
from jax.experimental import pallas as pl
from jax.experimental.pallas import tpu as pltpu


LANE = 128     # vreg lane width (last dim)
SUBLANE = 8    # f32 sublane width (second-to-last dim)


def _round_up(x: int, m: int) -> int:
    return (x + m - 1) // m * m


# ----------------------------- Pallas kernel --------------------------------
def _linear_kernel(x_ref, w_ref, b_ref, o_ref):
    # x_ref: [tn, D_in], w_ref: [D_in, Dn], b_ref: [1, Dn].
    # Dn is a multiple of 128 -> the store below is an unmasked full-vreg vst.
    # D_in is left at its logical size: the MXU pads K internally, so padding
    # it would only inflate the dominant (x) HBM stream.
    acc = jnp.dot(x_ref[...], w_ref[...], preferred_element_type=jnp.float32)
    o_ref[...] = (acc + b_ref[...].astype(jnp.float32)).astype(o_ref.dtype)


def pallas_linear(x, w, b, *, tile_n: int = 256, out_dtype=None):
    """N-tiled Pallas linear: y = x @ w + b.

    x: [N, D_in], w: [D_in, D_out], b: [1, D_out] -> [N, D_out]
    out_dtype lets the caller emit bf16 activations (halves the output HBM
    stream); accumulation and bias add stay f32 regardless.
    """
    N, D_in = x.shape
    D_out = w.shape[1]
    out_dtype = x.dtype if out_dtype is None else jnp.dtype(out_dtype)

    # Lane-dense output/weight columns only; skip entirely when already aligned.
    Dn = _round_up(D_out, LANE)
    if Dn != D_out:
        w = jnp.pad(w, ((0, 0), (0, Dn - D_out)))
        b = jnp.pad(b, ((0, 0), (0, Dn - D_out)))

    # Sublane-aligned row tile; ragged last block handled by Pallas masking.
    tn = min(tile_n, _round_up(N, SUBLANE))
    grid = (pl.cdiv(N, tn),)

    bpe_x = jnp.dtype(x.dtype).itemsize
    bpe_w = jnp.dtype(w.dtype).itemsize
    bpe_o = jnp.dtype(out_dtype).itemsize

    # VMEM footprint: double-buffered x/out tiles + (resident) W and b.
    footprint = (2 * tn * D_in * bpe_x          # x tiles (double-buffered)
                 + 2 * tn * Dn * bpe_o          # out tiles (double-buffered)
                 + 2 * (D_in * Dn + Dn) * bpe_w)  # W, b (conservatively 2x)
    vmem_limit = int(min(max(2 * footprint, 16 << 20), 60 << 20))

    cost = pl.CostEstimate(
        flops=2 * N * D_in * Dn,
        bytes_accessed=(N * D_in * bpe_x + D_in * Dn * bpe_w
                        + Dn * bpe_w + N * Dn * bpe_o),
        transcendentals=0,
    )

    out = pl.pallas_call(
        _linear_kernel,
        out_shape=jax.ShapeDtypeStruct((N, Dn), out_dtype),
        grid=grid,
        in_specs=[
            # x: streamed / double-buffered per row tile, logical D_in width.
            pl.BlockSpec((tn, D_in), lambda i: (i, 0),
                         memory_space=pltpu.MemorySpace.VMEM),
            # W, b: constant index_map -> fetched once, resident across grid.
            pl.BlockSpec((D_in, Dn), lambda i: (0, 0),
                         memory_space=pltpu.MemorySpace.VMEM),
            pl.BlockSpec((1, Dn), lambda i: (0, 0),
                         memory_space=pltpu.MemorySpace.VMEM),
        ],
        out_specs=pl.BlockSpec((tn, Dn), lambda i: (i, 0),
                               memory_space=pltpu.MemorySpace.VMEM),
        compiler_params=pltpu.CompilerParams(
            # Row tiles are independent -> shard across v7x's 2 TensorCores.
            dimension_semantics=("parallel",),
            vmem_limit_bytes=vmem_limit,
        ),
        cost_estimate=cost,
    )(x, w, b)

    # Only slice when columns were actually padded (no-op pass otherwise).
    if Dn != D_out:
        out = out[:, :D_out]
    return out


# --------------------------- Module equivalents ------------------------------
class LinearModule:
    """Inner module wrapped by DummyPatch (stands in for torch.nn.Linear)."""

    def __init__(self, d_in, d_out, *, min_rows_for_pallas: int = 512):
        # Deterministic parameter init (synthetic, not a checkpoint load).
        kw, kb = jax.random.split(jax.random.PRNGKey(42))
        self.w = jax.random.normal(kw, (d_in, d_out), jnp.float32) * 0.02
        self.b = jax.random.normal(kb, (1, d_out), jnp.float32) * 0.02
        self.min_rows_for_pallas = min_rows_for_pallas

    def __call__(self, x, *, force_pallas: bool = False):
        # Tiny shapes are pure pallas_call launch/DMA overhead; let XLA fuse
        # them unless the caller explicitly forces the Pallas path.
        if force_pallas or x.shape[0] >= self.min_rows_for_pallas:
            return pallas_linear(x, self.w, self.b)
        return x @ self.w + self.b


class DummyPatch:
    """JAX port of the PyTorch DummyPatch wrapper: pure dispatch, no compute."""

    def __init__(self, module, dummy_float: float = 0.0):
        self.module = module
        self.dummy_float = dummy_float

    def __call__(self, *args, **kwargs):
        if isinstance(self.module, DummyPatch):
            raise Exception(f"Calling nested dummy patch! {self.dummy_float}")
        return self.module(*args, **kwargs)


# --------------------------------- Driver ------------------------------------
if __name__ == "__main__":
    # Small shape consistent with the wrapped module: seq=8, hidden=32.
    N, D = 8, 32
    key = jax.random.PRNGKey(0)
    x = jax.random.normal(key, (N, D), jnp.float32)

    inner = LinearModule(D, D)
    patched = DummyPatch(inner, dummy_float=1.5)

    # Force the Pallas path at the small shape so the kernel itself is exercised
    # (column-padded Dn=128, single ragged-free grid step).
    out = patched(x, force_pallas=True)
    out = jax.block_until_ready(out)

    # Reference check (plain JAX) — DummyPatch must be transparent.
    ref = x @ inner.w + inner.b
    assert out.shape == (N, D)
    assert jnp.allclose(out, ref, atol=1e-5, rtol=1e-5)

    # Larger, already lane-aligned shape exercises the pad-free fast path,
    # the N-tiled grid (grid=(4,)) and megacore sharding.
    N2, D2 = 1024, 256
    k2 = jax.random.PRNGKey(1)
    x2 = jax.random.normal(k2, (N2, D2), jnp.float32)
    inner2 = LinearModule(D2, D2)
    patched2 = DummyPatch(inner2)
    out2 = jax.block_until_ready(patched2(x2))          # N >= 512 -> Pallas path
    ref2 = x2 @ inner2.w + inner2.b
    assert jnp.allclose(out2, ref2, atol=1e-4, rtol=1e-4)

    # Ragged-N case: last row block is masked by Pallas (no row padding pass).
    N3 = 777
    x3 = jax.random.normal(jax.random.PRNGKey(2), (N3, D2), jnp.float32)
    out3 = jax.block_until_ready(pallas_linear(x3, inner2.w, inner2.b))
    ref3 = x3 @ inner2.w + inner2.b
    assert out3.shape == (N3, D2)
    assert jnp.allclose(out3, ref3, atol=1e-4, rtol=1e-4)

    # Nested DummyPatch must raise, matching the PyTorch semantics.
    nested = DummyPatch(DummyPatch(inner), dummy_float=2.0)
    try:
        nested(x)
        raise AssertionError("nested DummyPatch did not raise")
    except Exception as e:
        assert "Calling nested dummy patch" in str(e)

    print("KERNEL_OK")
</pallas_src>

<mosaic_0001>
module attributes {stable_mosaic.version = 11 : i64} {
  func.func @_linear_kernel(%arg0: i32, %arg1: memref<8x32xf32, #tpu.memory_space<vmem>>, %arg2: memref<32x128xf32, #tpu.memory_space<vmem>>, %arg3: memref<1x128xf32, #tpu.memory_space<vmem>>, %arg4: memref<8x128xf32, #tpu.memory_space<vmem>>) attributes {dimension_semantics = [#tpu.dimension_semantics<parallel>], iteration_bounds = array<i64: 1>, scalar_prefetch = 0 : i64, scratch_operands = 0 : i64, tpu.core_type = #tpu.core_type<tc>, window_params = [{transform_indices = @transform_0, window_bounds = array<i64: 8, 32>}, {pipeline_mode = #tpu.pipeline_mode<synchronous>, transform_indices = @transform_1, window_bounds = array<i64: 32, 128>}, {pipeline_mode = #tpu.pipeline_mode<synchronous>, transform_indices = @transform_2, window_bounds = array<i64: 1, 128>}, {transform_indices = @transform_3, window_bounds = array<i64: 8, 128>}]} {
    %c0 = arith.constant 0 : index
    %c0_0 = arith.constant 0 : index
    %0 = vector.load %arg1[%c0, %c0_0] : memref<8x32xf32, #tpu.memory_space<vmem>>, vector<8x32xf32>
    %c0_1 = arith.constant 0 : index
    %c0_2 = arith.constant 0 : index
    %1 = vector.load %arg2[%c0_1, %c0_2] : memref<32x128xf32, #tpu.memory_space<vmem>>, vector<32x128xf32>
    %cst = arith.constant dense<0.000000e+00> : vector<8x128xf32>
    %2 = tpu.matmul %0, %1, %cst {dimension_numbers = #tpu.dot_dimension_numbers<[1], [0], [0], [1], [0, 0, 1, 1], [], []>} : vector<8x32xf32>, vector<32x128xf32>, vector<8x128xf32> -> vector<8x128xf32>
    %c0_3 = arith.constant 0 : index
    %c0_4 = arith.constant 0 : index
    %3 = vector.load %arg3[%c0_3, %c0_4] : memref<1x128xf32, #tpu.memory_space<vmem>>, vector<1x128xf32>
    %4 = vector.broadcast %3 : vector<1x128xf32> to vector<8x128xf32>
    %5 = arith.addf %2, %4 : vector<8x128xf32>
    %c0_5 = arith.constant 0 : index
    %c0_6 = arith.constant 0 : index
    %6 = vector.load %arg4[%c0_5, %c0_6] : memref<8x128xf32, #tpu.memory_space<vmem>>, vector<8x128xf32>
    tpu.vector_store %arg4[%c0_5, %c0_6], %5 {strides = array<i32>} : memref<8x128xf32, #tpu.memory_space<vmem>>, vector<8x128xf32>,
    return
  }
  func.func @transform_0(%arg0: i32) -> (i32, i32) {
    %c0_i32 = arith.constant 0 : i32
    %c0_i32_0 = arith.constant 0 : i32
    return %arg0, %c0_i32 : i32, i32
  }
  func.func @transform_1(%arg0: i32) -> (i32, i32) {
    %c0_i32 = arith.constant 0 : i32
    %c0_i32_0 = arith.constant 0 : i32
    %c0_i32_1 = arith.constant 0 : i32
    return %c0_i32, %c0_i32_0 : i32, i32
  }
  func.func @transform_2(%arg0: i32) -> (i32, i32) {
    %c0_i32 = arith.constant 0 : i32
    %c0_i32_0 = arith.constant 0 : i32
    %c0_i32_1 = arith.constant 0 : i32
    return %c0_i32, %c0_i32_0 : i32, i32
  }
  func.func @transform_3(%arg0: i32) -> (i32, i32) {
    %c0_i32 = arith.constant 0 : i32
    %c0_i32_0 = arith.constant 0 : i32
    return %arg0, %c0_i32 : i32, i32
  }
}

</mosaic_0001>

<bundles_post_ra>
// kernel: tpu_custom_call.1
= control target key start
LH: loop header
LB: loop body
LE: loop exit
PB: predicated region body
PF: predicated region fallthrough
CT: control target
= control target key end

     0   :  { %8 = vsyncpa [#allocation3], 0  ;;  %s219_s0 = inlined_call_operand.hbm [shape: f32[8,32], index: 0, kind: input, shape index: {}]   ;;  %s220_s1 = inlined_call_operand.hbm [shape: f32[32,128], index: 1, kind: input, shape index: {}]   ;;  %s221_s2 = inlined_call_operand.vmem [shape: f32[1,128], index: 2, kind: input, shape index: {}]   ;;  %s222_s3 = inlined_call_operand.hbm [shape: f32[8,128], index: 3, kind: output, shape index: {}]  }
   0x1   :  { %9 = vsyncpa [#allocation6], 0 }
   0x2   :  { %10 = vsyncpa [#allocation4], 0  ;;  %s16_s14 = sshll.u32 %s219_s0, 4  ;;  %s182_s15 = smov [#allocation2]   ;;  %s17_s14 = int_to_ptr.hbm [resolvable:$true] %s16_s14 }
   0x3   :  { %s18_s16 = sshll.u32 %s182_s15, 4  ;;  %s26_s19 = sshll.u32 %s220_s1, 4  ;;  %s19_s16 = int_to_ptr.vmem [resolvable:$true] %s18_s16  ;;  %s27_s19 = int_to_ptr.hbm [resolvable:$true] %s26_s19 }
   0x4   :  { %21 = dma.hbm_to_vmem [thread:$0]  %s17_s14, 128, %s19_s16, [#allocation3]  }
   0x5   :  { %s183_s20 = smov [#allocation5]   ;;  %s184_s22 = smov 128  }
   0x6   :  { %s28_s21 = sshll.u32 %s183_s20, 4  ;;  %s185_s23 = smov 8   ;;  %s29_s21 = int_to_ptr.vmem [resolvable:$true] %s28_s21 }
   0x7   :  { %34 = dma.hbm_to_vmem [thread:$0]  %s27_s19, 512, %s29_s21, [#allocation6], %s184_s22, %s184_s22, %s185_s23  }
   0x8   :  { %176 = dma.done.wait [#allocation3], 128  }
   0x9   :  { %177 = vsyncadd [#allocation3], 4294967168 }
   0xa   :  { %178 = dma.done.wait [#allocation6], 512  }
   0xb   :  { %179 = vsyncadd [#allocation6], 4294966784  ;;  %v49_v0 = vld [vmem:[#allocation5 + $0x18] sm:$0xff]  ;;  %v48_v1 = vld [vmem:[#allocation5 + $0x10] sm:$0xff]  ;;  %vm54_vm0 = vcmask 261120   ;;  %s186_s24 = smov [#allocation7]  }
   0xc   :  { %70 = vmatpush.msra.mxu0 %v49_v0  ;;  %v47_v2 = vld [vmem:[#allocation5 + $0x8] sm:$0xff]  ;;  %v46_v3 = vld [vmem:[#allocation5] sm:$0xff]  ;;  %v45_v4 = vld [vmem:[#allocation2] sm:$0xff]  ;;  %s84_s25 = sshll.u32 %s186_s24, 4  ;;  %s86_s28 = sshll.u32 %s222_s3, 4  ;;  %s85_s25 = int_to_ptr.vmem [resolvable:$true] %s84_s25  ;;  %s87_s28 = int_to_ptr.hbm [resolvable:$true] %s86_s28 }
   0xd   :  { %v103_v5 = vld [vmem:[%s221_s2] ss:$0 sm:$0xff] }
   0xe   :  { %71 = vmatpush.msra.mxu0 %v48_v1 }
  0x10   :  { %72 = vmatpush.msra.mxu0 %v47_v2 }
  0x12   :  { %73 = vmatpush.msra.mxu0 %v46_v3 }
  0x13   :  { %97 = vmatmul.msk.f32.vlgmr.msra.gmra.mxu0 %vm54_vm0, %v45_v4 }
  0x90   :  { %v75_v6 = vpop.f32.mrf.mxu0 }
  0x91   :  { %v76_v7 = vadd.f32 %v103_v5, %v75_v6 }
  0x93   :  { %78 = vst [vmem:[#allocation7] sm:$0xff] %v76_v7 }
  0x94   :  { %89 = dma.vmem_to_hbm [thread:$0]  %s85_s25, 128, %s87_s28, [#allocation4]  }
  0x95   :  { %180 = dma.done.wait [#allocation4], 128  }
  0x96   :  { %181 = vsyncadd [#allocation4], 4294967168 }
  0x97   :  { %94 = vsyncpa [#allocation3], 1 }
  0x98   :  { %95 = vsyncpa [#allocation6], 1 }
  0x99   :  { %96 = vsyncpa [#allocation4], 1 }

</bundles_post_ra>
